<compile_context>
chip_gen: v7x
topology: tpu7x:2x2x1
jax: 0.10.0
libtpu: 0.0.40
codegen_flags: <defaults>
</compile_context>

<pallas_src>
import jax
import jax.numpy as jnp
from jax.experimental import pallas as pl
from jax.experimental.pallas import tpu as pltpu

LANE = 128


def _mish_kernel(x_ref, o_ref):
    x = x_ref[...].astype(jnp.float32)
    # Single exp; clamp so it never overflows (for x > 20, mish(x) == x in f32).
    e = jnp.exp(jnp.minimum(x, 20.0))
    num = e * (e + 2.0)            # (1 + e)^2 - 1, cancellation-free
    den = num + 2.0                # (1 + e)^2 + 1
    # Divide via approx EUP reciprocal refined with two Newton-Raphson steps
    # (VALU-only, effectively exact in f32).
    r = pl.reciprocal(den, approx=True)
    r = r * (2.0 - den * r)
    r = r * (2.0 - den * r)
    t = num * r                    # tanh(softplus(x))
    y = jnp.where(x > 20.0, x, x * t)
    o_ref[...] = y.astype(o_ref.dtype)


def _round_up(n: int, m: int) -> int:
    return ((n + m - 1) // m) * m


def mish(x: jax.Array, *, tile_rows: int = 4096) -> jax.Array:
    """Elementwise Mish, matching torch semantics: x * tanh(softplus(x))."""
    orig_shape = x.shape
    orig_dtype = x.dtype
    total = x.size

    x_flat = jnp.reshape(x, (-1,))
    rem = total % LANE
    if rem != 0:
        # Only pad the trailing partial lane row (cheap); typical NCHW sizes
        # (H*W multiple of 128) skip this entirely.
        x_flat = jnp.pad(x_flat, (0, LANE - rem))
    rows = x_flat.size // LANE
    x2d = jnp.reshape(x_flat, (rows, LANE))

    if rows <= tile_rows:
        # Single block equal to the full array (allowed regardless of the
        # (8,128) divisibility rule).
        tr = rows
        grid = (1,)
    else:
        # Fixed large tile (multiple of 8 sublanes); ragged last block is
        # masked by Pallas — no tile shrinking for awkward row counts.
        tr = _round_up(min(tile_rows, rows), 8)
        grid = (pl.cdiv(rows, tr),)

    out2d = pl.pallas_call(
        _mish_kernel,
        out_shape=jax.ShapeDtypeStruct((rows, LANE), orig_dtype),
        grid_spec=pltpu.PrefetchScalarGridSpec(
            num_scalar_prefetch=0,
            grid=grid,
            in_specs=[pl.BlockSpec((tr, LANE), lambda i: (i, 0))],
            out_specs=pl.BlockSpec((tr, LANE), lambda i: (i, 0)),
        ),
        compiler_params=pltpu.CompilerParams(
            dimension_semantics=("parallel",),
        ),
    )(x2d)

    out_flat = jnp.reshape(out2d, (-1,))
    if rem != 0:
        out_flat = out_flat[:total]
    return jnp.reshape(out_flat, orig_shape)


def _ref_mish(x):
    xf = x.astype(jnp.float32)
    return (xf * jnp.tanh(jnp.logaddexp(xf, 0.0))).astype(x.dtype)


if __name__ == "__main__":
    key = jax.random.PRNGKey(0)
    k1, k2, k3 = jax.random.split(key, 3)

    # NCHW, same convention as the PyTorch module would receive.
    x = jax.random.normal(k1, (2, 4, 16, 16), dtype=jnp.float32) * 3.0
    out = jax.block_until_ready(mish(x))
    assert out.shape == x.shape and out.dtype == x.dtype
    assert jnp.allclose(out, _ref_mish(x), atol=1e-5, rtol=1e-5)

    # Non-lane-aligned total (exercises the pad / full-array-block path).
    x2 = jax.random.normal(k2, (3, 5, 7), dtype=jnp.float32) * 4.0
    out2 = jax.block_until_ready(mish(x2))
    assert out2.shape == x2.shape
    assert jnp.allclose(out2, _ref_mish(x2), atol=1e-5, rtol=1e-5)

    # Ragged last block (rows=20, tr=8 -> grid=3 with masked final block).
    x3 = jax.random.normal(k3, (20, 128), dtype=jnp.float32) * 3.0
    out3 = jax.block_until_ready(mish(x3, tile_rows=8))
    assert jnp.allclose(out3, _ref_mish(x3), atol=1e-5, rtol=1e-5)

    print("KERNEL_OK")
</pallas_src>

<mosaic_0001>
module attributes {stable_mosaic.version = 11 : i64} {
  func.func @_mish_kernel(%arg0: i32, %arg1: memref<16x128xf32, #tpu.memory_space<vmem>>, %arg2: memref<16x128xf32, #tpu.memory_space<vmem>>) attributes {dimension_semantics = [#tpu.dimension_semantics<parallel>], iteration_bounds = array<i64: 1>, scalar_prefetch = 0 : i64, scratch_operands = 0 : i64, tpu.core_type = #tpu.core_type<tc>, window_params = [{transform_indices = @transform_0, window_bounds = array<i64: 16, 128>}, {transform_indices = @transform_1, window_bounds = array<i64: 16, 128>}]} {
    %c0 = arith.constant 0 : index
    %c0_0 = arith.constant 0 : index
    %0 = vector.load %arg1[%c0, %c0_0] : memref<16x128xf32, #tpu.memory_space<vmem>>, vector<16x128xf32>
    %cst = arith.constant 2.000000e+01 : f32
    %1 = vector.broadcast %cst : f32 to vector<16x128xf32>
    %2 = arith.minimumf %0, %1 : vector<16x128xf32>
    %3 = math.exp %2 : vector<16x128xf32>
    %cst_1 = arith.constant 2.000000e+00 : f32
    %4 = vector.broadcast %cst_1 : f32 to vector<16x128xf32>
    %5 = arith.addf %3, %4 : vector<16x128xf32>
    %6 = arith.mulf %3, %5 : vector<16x128xf32>
    %cst_2 = arith.constant 2.000000e+00 : f32
    %7 = vector.broadcast %cst_2 : f32 to vector<16x128xf32>
    %8 = arith.addf %6, %7 : vector<16x128xf32>
    %9 = tpu.reciprocal %8 {approx = true} : vector<16x128xf32> -> vector<16x128xf32>
    %10 = arith.mulf %8, %9 : vector<16x128xf32>
    %cst_3 = arith.constant 2.000000e+00 : f32
    %11 = vector.broadcast %cst_3 : f32 to vector<16x128xf32>
    %12 = arith.subf %11, %10 : vector<16x128xf32>
    %13 = arith.mulf %9, %12 : vector<16x128xf32>
    %14 = arith.mulf %8, %13 : vector<16x128xf32>
    %cst_4 = arith.constant 2.000000e+00 : f32
    %15 = vector.broadcast %cst_4 : f32 to vector<16x128xf32>
    %16 = arith.subf %15, %14 : vector<16x128xf32>
    %17 = arith.mulf %13, %16 : vector<16x128xf32>
    %18 = arith.mulf %6, %17 : vector<16x128xf32>
    %cst_5 = arith.constant 2.000000e+01 : f32
    %19 = vector.broadcast %cst_5 : f32 to vector<16x128xf32>
    %20 = arith.cmpf ogt, %0, %19 : vector<16x128xf32>
    %21 = arith.mulf %0, %18 : vector<16x128xf32>
    %22 = arith.select %20, %0, %21 : vector<16x128xi1>, vector<16x128xf32>
    %c0_6 = arith.constant 0 : index
    %c0_7 = arith.constant 0 : index
    %23 = vector.load %arg2[%c0_6, %c0_7] : memref<16x128xf32, #tpu.memory_space<vmem>>, vector<16x128xf32>
    tpu.vector_store %arg2[%c0_6, %c0_7], %22 {strides = array<i32>} : memref<16x128xf32, #tpu.memory_space<vmem>>, vector<16x128xf32>,
    return
  }
  func.func @transform_0(%arg0: i32) -> (i32, i32) {
    %c0_i32 = arith.constant 0 : i32
    %c0_i32_0 = arith.constant 0 : i32
    return %arg0, %c0_i32 : i32, i32
  }
  func.func @transform_1(%arg0: i32) -> (i32, i32) {
    %c0_i32 = arith.constant 0 : i32
    %c0_i32_0 = arith.constant 0 : i32
    return %arg0, %c0_i32 : i32, i32
  }
}

</mosaic_0001>

<bundles_post_ra>
// kernel: tpu_custom_call.1
= control target key start
LH: loop header
LB: loop body
LE: loop exit
PB: predicated region body
PF: predicated region fallthrough
CT: control target
= control target key end

     0   :  { %6 = vsyncpa [#allocation3], 0  ;;  %s182_s0 = inlined_call_operand.hbm [shape: f32[16,128], index: 0, kind: input, shape index: {}]   ;;  %s183_s1 = inlined_call_operand.hbm [shape: f32[16,128], index: 1, kind: output, shape index: {}]  }
   0x1   :  { %7 = vsyncpa [#allocation4], 0  ;;  %s138_s6 = smov [#allocation2]   ;;  %s90_s10 = scalar_lea.hbm %s182_s0, 256 }
   0x2   :  { %s13_s7 = sshll.u32 %s138_s6, 4  ;;  %p91_p0 = scmp.ne.s32.totalorder %s182_s0, %s90_s10  ;;  %s14_s7 = int_to_ptr.vmem [resolvable:$true] %s13_s7 }
   0x3   :  { %p94_p1 = scmp.lt.u32.totalorder %s90_s10, %s182_s0 }
   0x5   :  { %p96_p2 = pnand %p94_p1, %p91_p0 }
   0x7   :  { %99 = shalt.err (!%p96_p2)
}
   0x8   :  { %s100_s15 = scalar_lea.vmem %s14_s7, 256  ;;  %p105_p4 = scmp.lt.s32.totalorder %s14_s7, %s14_s7 }
   0x9   :  { %p101_p3 = scmp.ne.s32.totalorder %s14_s7, %s100_s15  ;;  %p106_p5 = scmp.lt.s32.totalorder %s100_s15, %s100_s15 }
   0xb   :  { %p107_p6 = por %p106_p5, %p105_p4 }
   0xd   :  { %p108_p7 = pnand %p107_p6, %p101_p3 }
   0xf   :  { %111 = shalt.err (!%p108_p7)
}
  0x10   :  { %s139_s16 = smov 128   ;;  %s140_s17 = smov 8  }
  0x11   :  { %19 = dma.hbm_to_vmem [thread:$0]  %s182_s0, 256, %s14_s7, [#allocation3], %s139_s16, %s139_s16, %s140_s17  }
  0x12   :  { %134 = dma.done.wait [#allocation3], 256  }
  0x13   :  { %135 = vsyncadd [#allocation3], 4294967040  ;;  %v23_v0 = vld [vmem:[#allocation2] sm:$0xff]  ;;  %v24_v1 = vld [vmem:[#allocation2 + $0x8] sm:$0xff]  ;;  %s141_s0 = smov [#allocation5]  }
  0x14   :  { %v25_v2 = vmin.f32 %v23_v0, 20.0  ;;  %v26_v3 = vmin.f32 %v24_v1, 20.0  ;;  %vm53_vm0 = vcmp.gt.f32.partialorder %v23_v0, 20.0  ;;  %s66_s20 = sshll.u32 %s141_s0, 4  ;;  %vm54_vm1 = vcmp.gt.f32.partialorder %v24_v1, 20.0  ;;  %s67_s20 = int_to_ptr.vmem [resolvable:$true] %s66_s20 }
  0x15   :  { %s112_s21 = scalar_lea.vmem %s67_s20, 256  ;;  %p117_p9 = scmp.lt.s32.totalorder %s67_s20, %s67_s20 }
  0x16   :  { %v27_v4 = vmul.f32 1.442695, %v25_v2  ;;  %v29_v5 = vmul.f32 1.442695, %v26_v3  ;;  %p113_p8 = scmp.ne.s32.totalorder %s67_s20, %s112_s21  ;;  %p118_p10 = scmp.lt.s32.totalorder %s112_s21, %s112_s21 }
  0x18   :  { %82 = vpow2.f32 %v27_v4  ;;  %p119_p11 = por %p118_p10, %p117_p9 }
  0x19   :  { %84 = vpow2.f32 %v29_v5 }
  0x1a   :  { %p120_p12 = pnand %p119_p11, %p113_p8 }
  0x22   :  { %v83_v6 = vpop.eup %82 }
  0x23   :  { %v85_v7 = vpop.eup %84  ;;  %v31_v8 = vadd.f32 2.0, %v83_v6 }
  0x24   :  { %v32_v9 = vadd.f32 2.0, %v85_v7 }
  0x25   :  { %v33_v10 = vmul.f32 %v83_v6, %v31_v8 }
  0x26   :  { %v34_v11 = vmul.f32 %v85_v7, %v32_v9 }
  0x27   :  { %v35_v12 = vadd.f32 2.0, %v33_v10 }
  0x28   :  { %v36_v13 = vadd.f32 2.0, %v34_v11 }
  0x29   :  { %86 = vrcp.f32 %v35_v12 }
  0x2a   :  { %88 = vrcp.f32 %v36_v13 }
  0x33   :  { %v87_v14 = vpop.eup %86 }
  0x34   :  { %v89_v15 = vpop.eup %88  ;;  %v39_v16 = vmul.f32 %v87_v14, %v35_v12 }
  0x35   :  { %v40_v17 = vmul.f32 %v89_v15, %v36_v13 }
  0x36   :  { %v41_v18 = vsub.f32 2.0, %v39_v16 }
  0x37   :  { %v42_v19 = vsub.f32 2.0, %v40_v17 }
  0x38   :  { %v43_v20 = vmul.f32 %v87_v14, %v41_v18 }
  0x39   :  { %v44_v21 = vmul.f32 %v89_v15, %v42_v19 }
  0x3a   :  { %v45_v22 = vmul.f32 %v43_v20, %v35_v12 }
  0x3b   :  { %v46_v23 = vmul.f32 %v44_v21, %v36_v13 }
  0x3c   :  { %v47_v24 = vsub.f32 2.0, %v45_v22 }
  0x3d   :  { %v48_v25 = vsub.f32 2.0, %v46_v23 }
  0x3e   :  { %v49_v26 = vmul.f32 %v47_v24, %v43_v20 }
  0x3f   :  { %v50_v27 = vmul.f32 %v48_v25, %v44_v21 }
  0x40   :  { %v51_v28 = vmul.f32 %v49_v26, %v33_v10 }
  0x41   :  { %v52_v29 = vmul.f32 %v50_v27, %v34_v11 }
  0x42   :  { %v55_v30 = vmul.f32 %v51_v28, %v23_v0 }
  0x43   :  { %v56_v31 = vmul.f32 %v52_v29, %v24_v1 }
  0x44   :  { %v57_v32 = vsel %vm53_vm0, %v23_v0, %v55_v30 }
  0x45   :  { %59 = vst [vmem:[#allocation5] sm:$0xff] %v57_v32  ;;  %v58_v33 = vsel %vm54_vm1, %v24_v1, %v56_v31 }
  0x46   :  { %60 = vst [vmem:[#allocation5 + $0x8] sm:$0xff] %v58_v33 }
  0x47   :  { %123 = shalt.err (!%p120_p12)
}
  0x48   :  { %s124_s24 = scalar_lea.hbm %s183_s1, 256 }
  0x49   :  { %p125_p13 = scmp.ne.s32.totalorder %s183_s1, %s124_s24  ;;  %p128_p0 = scmp.lt.u32.totalorder %s124_s24, %s183_s1 }
  0x4b   :  { %p130_p1 = pnand %p128_p0, %p125_p13 }
  0x4d   :  { %133 = shalt.err (!%p130_p1)
}
  0x4e   :  { %72 = dma.vmem_to_hbm [thread:$0]  %s67_s20, 256, %s183_s1, [#allocation4], %s139_s16, %s139_s16, %s140_s17  }
  0x4f   :  { %136 = dma.done.wait [#allocation4], 256  }
  0x50   :  { %137 = vsyncadd [#allocation4], 4294967040 }
  0x51   :  { %76 = vsyncpa [#allocation3], 1 }
  0x52   :  { %77 = vsyncpa [#allocation4], 1 }

</bundles_post_ra>
